<compile_context>
chip_gen: v6e
topology: v6e:2x2x1
jax: 0.10.0
libtpu: 0.0.40
codegen_flags: <defaults>
</compile_context>

<pallas_src>
import math

import jax
import jax.numpy as jnp
from jax.experimental import pallas as pl
from jax.experimental.pallas import tpu as pltpu


def _learned_sinusoidal_kernel(x_ref, w_ref, o_ref):
    # x_ref: (1, TB)  batch slice on the lane axis
    # w_ref: (H, 1)   learned frequencies (resident)
    # o_ref: (1+2H, TB) rows = [x | sin(freqs) | cos(freqs)]
    x = x_ref[...].astype(jnp.float32)                 # (1, TB)
    w = w_ref[...].astype(jnp.float32)                 # (H, 1)
    h = w.shape[0]

    # Outer-product broadcast on the VPU; transcendentals on the EUP.
    freqs = w * x * jnp.float32(2.0 * math.pi)         # (H, TB)

    # Three direct, full-lane-width stores — no concatenate / relayout temp.
    o_ref[0:1, :] = x.astype(o_ref.dtype)
    o_ref[1:1 + h, :] = jnp.sin(freqs).astype(o_ref.dtype)
    o_ref[1 + h:1 + 2 * h, :] = jnp.cos(freqs).astype(o_ref.dtype)


def _round_up(n, m):
    return ((n + m - 1) // m) * m


def learned_sinusoidal_pos_emb(x, weights):
    """x: (B,), weights: (half_dim,) -> (B, 2*half_dim + 1)."""
    B = x.shape[0]
    H = weights.shape[0]
    d_out = 2 * H + 1
    out_dtype = jnp.result_type(x.dtype, weights.dtype)

    # Batch on the lane axis inside the kernel (lane-dense stores).
    x2 = x.reshape(1, B)             # metadata reshape only
    w2 = weights.reshape(H, 1)

    # Tile selection:
    #  * small B: single full-width block (last dim == array dim is allowed).
    #  * large B: ~2 MiB output blocks (amortises per-step overhead), a
    #    multiple of 128 lanes, >=2 grid steps so v7x's 2 TCs share the work,
    #    and small enough that double-buffered blocks fit v5e's 16 MiB scoped
    #    VMEM with large margin.
    if B <= 256:
        tb = B
    else:
        target = max(128, (2 * 1024 * 1024) // (4 * d_out))
        tb = min(_round_up(B // 2, 128), _round_up(target, 128), 32768)
    grid = (pl.cdiv(B, tb),)

    out_t = pl.pallas_call(
        _learned_sinusoidal_kernel,
        out_shape=jax.ShapeDtypeStruct((d_out, B), out_dtype),
        grid=grid,
        in_specs=[
            pl.BlockSpec((1, tb), lambda i: (0, i)),    # batch slice on lanes
            pl.BlockSpec((H, 1), lambda i: (0, 0)),     # weights resident
        ],
        out_specs=pl.BlockSpec((d_out, tb), lambda i: (0, i)),
        compiler_params=pltpu.CompilerParams(
            dimension_semantics=("parallel",)),
    )(x2, w2)

    # (d_out, B) -> (B, d_out): layout plumbing only; kernel stores stay dense.
    return out_t.T


def _reference(x, weights):
    """Pure-JAX mirror of the PyTorch forward."""
    xb = x[:, None].astype(jnp.float32)
    freqs = xb * weights[None, :].astype(jnp.float32) * (2.0 * math.pi)
    return jnp.concatenate([xb, jnp.sin(freqs), jnp.cos(freqs)], axis=-1)


if __name__ == "__main__":
    key = jax.random.PRNGKey(0)
    kx, kw = jax.random.split(key)

    # Module-sized example: batch=2, dim=16 (half_dim=8).
    B = 2
    dim = 16
    half_dim = dim // 2

    x = jax.random.normal(kx, (B,), jnp.float32)            # timesteps
    weights = jax.random.normal(kw, (half_dim,), jnp.float32)

    out = jax.block_until_ready(learned_sinusoidal_pos_emb(x, weights))
    ref = _reference(x, weights)
    assert out.shape == (B, dim + 1), out.shape
    assert jnp.allclose(out, ref, atol=1e-4, rtol=1e-4)

    # Also exercise the multi-step grid with a ragged last block.
    B2 = 300
    x2 = jax.random.normal(kx, (B2,), jnp.float32)
    out2 = jax.block_until_ready(learned_sinusoidal_pos_emb(x2, weights))
    ref2 = _reference(x2, weights)
    assert out2.shape == (B2, dim + 1), out2.shape
    assert jnp.allclose(out2, ref2, atol=1e-4, rtol=1e-4)

    print("KERNEL_OK")
</pallas_src>

<mosaic_0001>
module attributes {stable_mosaic.version = 11 : i64} {
  func.func @_learned_sinusoidal_kernel(%arg0: i32, %arg1: memref<1x2xf32, #tpu.memory_space<vmem>>, %arg2: memref<8x1xf32, #tpu.memory_space<vmem>>, %arg3: memref<17x2xf32, #tpu.memory_space<vmem>>) attributes {dimension_semantics = [#tpu.dimension_semantics<parallel>], iteration_bounds = array<i64: 1>, scalar_prefetch = 0 : i64, scratch_operands = 0 : i64, tpu.core_type = #tpu.core_type<tc>, window_params = [{transform_indices = @transform_0, window_bounds = array<i64: 1, 2>}, {pipeline_mode = #tpu.pipeline_mode<synchronous>, transform_indices = @transform_1, window_bounds = array<i64: 8, 1>}, {transform_indices = @transform_2, window_bounds = array<i64: 17, 2>}]} {
    %c0 = arith.constant 0 : index
    %c0_0 = arith.constant 0 : index
    %0 = vector.load %arg1[%c0, %c0_0] : memref<1x2xf32, #tpu.memory_space<vmem>>, vector<1x2xf32>
    %c0_1 = arith.constant 0 : index
    %c0_2 = arith.constant 0 : index
    %1 = vector.load %arg2[%c0_1, %c0_2] : memref<8x1xf32, #tpu.memory_space<vmem>>, vector<8x1xf32>
    %2 = vector.broadcast %1 : vector<8x1xf32> to vector<8x2xf32>
    %3 = vector.broadcast %0 : vector<1x2xf32> to vector<8x2xf32>
    %4 = arith.mulf %2, %3 : vector<8x2xf32>
    %cst = arith.constant 6.28318548 : f32
    %5 = vector.broadcast %cst : f32 to vector<8x2xf32>
    %6 = arith.mulf %4, %5 : vector<8x2xf32>
    %c0_3 = arith.constant 0 : index
    %c0_4 = arith.constant 0 : index
    %7 = vector.load %arg3[%c0_3, %c0_4] : memref<17x2xf32, #tpu.memory_space<vmem>>, vector<1x2xf32>
    tpu.vector_store %arg3[%c0_3, %c0_4], %0 {strides = array<i32>} : memref<17x2xf32, #tpu.memory_space<vmem>>, vector<1x2xf32>,
    %8 = math.sin %6 : vector<8x2xf32>
    %c1 = arith.constant 1 : index
    %c0_5 = arith.constant 0 : index
    %9 = vector.load %arg3[%c1, %c0_5] : memref<17x2xf32, #tpu.memory_space<vmem>>, vector<8x2xf32>
    tpu.vector_store %arg3[%c1, %c0_5], %8 {strides = array<i32>} : memref<17x2xf32, #tpu.memory_space<vmem>>, vector<8x2xf32>,
    %10 = math.cos %6 : vector<8x2xf32>
    %c9 = arith.constant 9 : index
    %c0_6 = arith.constant 0 : index
    %11 = vector.load %arg3[%c9, %c0_6] : memref<17x2xf32, #tpu.memory_space<vmem>>, vector<8x2xf32>
    tpu.vector_store %arg3[%c9, %c0_6], %10 {strides = array<i32>} : memref<17x2xf32, #tpu.memory_space<vmem>>, vector<8x2xf32>,
    return
  }
  func.func @transform_0(%arg0: i32) -> (i32, i32) {
    %c0_i32 = arith.constant 0 : i32
    %c0_i32_0 = arith.constant 0 : i32
    return %c0_i32, %arg0 : i32, i32
  }
  func.func @transform_1(%arg0: i32) -> (i32, i32) {
    %c0_i32 = arith.constant 0 : i32
    %c0_i32_0 = arith.constant 0 : i32
    %c0_i32_1 = arith.constant 0 : i32
    return %c0_i32, %c0_i32_0 : i32, i32
  }
  func.func @transform_2(%arg0: i32) -> (i32, i32) {
    %c0_i32 = arith.constant 0 : i32
    %c0_i32_0 = arith.constant 0 : i32
    return %c0_i32, %arg0 : i32, i32
  }
}

</mosaic_0001>

<bundles_post_ra>
// kernel: tpu_custom_call.1
= control target key start
LH: loop header
LB: loop body
LE: loop exit
PB: predicated region body
PF: predicated region fallthrough
CT: control target
= control target key end

     0   :  { %v266_v0 = vmov 0   ;;  %vm26_vm0 = vcmask 8192   ;;  %v19_v3 = vlaneseq  ;;  %v267_v20 = vmov 683565275   ;;  %s326_s1 = inlined_call_operand.vmem [shape: f32[8,1], index: 1, kind: input, shape index: {}]   ;;  %s327_s0 = inlined_call_operand.vmem [shape: f32[1,2], index: 0, kind: input, shape index: {}]   ;;  %s328_s2 = inlined_call_operand.vmem [shape: f32[17,2], index: 2, kind: output, shape index: {}]  }
   0x1   :  { %261 = vset.pattern.permute.xlu0 %v266_v0  ;;  %v12_v1 = vld [vmem:[%s326_s1] sm:$0xff]  ;;  %v268_v22 = vmov 2475754826   ;;  %v269_v25 = vmov 2131351028   ;;  %vm132_vm10 = vcmask 15360  }
   0x2   :  { %15 = vperm.xlu0 %261, %v12_v1   ;;  %v11_v2 = vld [vmem:[%s327_s0] sm:$0x1]  ;;  %v20_v4 = vshrl.u32 %v19_v3, 7  ;;  %v270_v28 = vmov 2102212464  }
   0x3   :  { %27 = vst.msk [vmem:[%s328_s2] sm:$0x1] %vm26_vm0, %v11_v2  ;;  %v271_v31 = vmov 920167782   ;;  %v272_v34 = vmov 1326507024  }
   0x4   :  { %v21_v5 = vsub.s32 0, %v20_v4 }
   0x6   :  { %v22_v6 = vrot.slane %v11_v2, %v21_v5 }
  0x7d   :  { %v16_v7 = vpop.permute.xlu0 %15 }
  0x7e   :  { %v24_v8 = vmul.f32 %v22_v6, %v16_v7 }
  0x80   :  { %v297_v9 = vmul.f32 6.2831855, %v24_v8 }
  0x82   :  { %v31_v10 = vand.u32 2139095040, %v297_v9  ;;  %v28_v14 = vand.u32 2147483647, %v297_v9  ;;  %vm30_vm8 = vcmp.lt.s32.totalorder %v297_v9, 0 }
  0x84   :  { %v32_v11 = vshrl.u32 %v31_v10, 23  ;;  %v35_v17 = vand.u32 8388607, %v28_v14  ;;  %vm29_vm9 = vcmp.le.f32.partialorder %v28_v14, 0.7853982 }
  0x86   :  { %v242_v12 = vadd.s32 4294967169, %v32_v11  ;;  %v36_v36 = vor.u32 8388608, %v35_v17 }
  0x88   :  { %v38_v13 = vadd.s32 1, %v242_v12  ;;  %v76_v50 = vshll.u32 %v36_v36, 8 }
  0x8a   :  { %vm39_vm1 = vcmp.gt.s32.totalorder %v38_v13, 0 }
  0x8b   :  { %v40_v15 = vsel %vm39_vm1, %v38_v13, 0  ;;  %vm120_vm1 = vweird.f32 %v297_v9 }
  0x8c   :  { %v42_v16 = vand.u32 31, %v40_v15  ;;  %v41_v19 = vshrl.u32 %v40_v15, 5 }
  0x8e   :  { %v43_v18 = vsub.s32 32, %v42_v16  ;;  %v45_v21 = vshll.u32 %v267_v20, %v42_v16  ;;  %v48_v23 = vshll.u32 %v268_v22, %v42_v16  ;;  %v51_v27 = vshll.u32 %v269_v25, %v42_v16 }
  0x8f   :  { %v54_v30 = vshll.u32 %v270_v28, %v42_v16  ;;  %v57_v33 = vshll.u32 %v271_v31, %v42_v16  ;;  %vm60_vm2 = vcmp.lt.s32.totalorder %v41_v19, 1  ;;  %vm63_vm3 = vcmp.lt.s32.totalorder %v41_v19, 4 }
  0x90   :  { %v46_v24 = vshrl.u32 %v268_v22, %v43_v18  ;;  %v49_v26 = vshrl.u32 %v269_v25, %v43_v18  ;;  %v52_v29 = vshrl.u32 %v270_v28, %v43_v18  ;;  %v55_v32 = vshrl.u32 %v271_v31, %v43_v18 }
  0x91   :  { %v58_v35 = vshrl.u32 %v272_v34, %v43_v18  ;;  %v44_v45 = vshrl.u32 %v267_v20, %v43_v18  ;;  %vm62_vm4 = vcmp.lt.s32.totalorder %v41_v19, 3  ;;  %vm61_vm5 = vcmp.lt.s32.totalorder %v41_v19, 2 }
  0x92   :  { %v47_v37 = vor.u32 %v46_v24, %v45_v21  ;;  %v50_v38 = vor.u32 %v49_v26, %v48_v23  ;;  %v53_v39 = vor.u32 %v52_v29, %v51_v27  ;;  %v56_v40 = vor.u32 %v55_v32, %v54_v30 }
  0x93   :  { %v59_v41 = vor.u32 %v58_v35, %v57_v33 }
  0x94   :  { %v65_v42 = vsel %vm63_vm3, %v53_v39, 2102212464  ;;  %v68_v43 = vsel %vm60_vm2, %v47_v37, %v50_v38  ;;  %v72_v44 = vsel %vm60_vm2, %v50_v38, %v53_v39  ;;  %v69_v46 = vsel %vm63_vm3, %v56_v40, 920167782 }
  0x95   :  { %v73_v47 = vsel %vm63_vm3, %v59_v41, 1326507024  ;;  %v70_v48 = vsel %vm62_vm4, %v53_v39, %v69_v46  ;;  %v64_v51 = vsel %vm60_vm2, %v44_v45, %v47_v37  ;;  %v66_v52 = vsel %vm62_vm4, %v50_v38, %v65_v42 }
  0x96   :  { %v74_v49 = vsel %vm62_vm4, %v56_v40, %v73_v47  ;;  %v71_v53 = vsel %vm61_vm5, %v68_v43, %v70_v48  ;;  %v67_v59 = vsel %vm61_vm5, %v64_v51, %v66_v52 }
  0x97   :  { %v75_v54 = vsel %vm61_vm5, %v72_v44, %v74_v49  ;;  %v306_v57 = vmul.u32.u64.low %v76_v50, %v71_v53  ;;  %v307_v58 = vmul.u32.u64.high %v76_v50, %v71_v53, %v306_v57  ;;  %v83_v61 = vmul.u32 %v76_v50, %v67_v59 }
  0x98   :  { %v303_v55 = vmul.u32.u64.low %v76_v50, %v75_v54  ;;  %v304_v56 = vmul.u32.u64.high %v76_v50, %v75_v54, %v303_v55 }
  0x99   :  { %v86_v60 = vadd.s32 1, %v307_v58 }
  0x9a   :  { %vm85_vm6 = vc.u32 %v304_v56, %v306_v57  ;;  %v84_v10 = vadd.s32 %v306_v57, %v304_v56 }
  0x9b   :  { %v87_v62 = vsel %vm85_vm6, %v86_v60, %v307_v58 }
  0x9c   :  { %v88_v63 = vadd.s32 %v87_v62, %v83_v61 }
  0x9e   :  { %v89_v0 = vadd.s32 536870912, %v88_v63 }
  0xa0   :  { %v90_v1 = vshrl.u32 %v89_v0, 30 }
  0xa2   :  { %v91_v2 = vshll.u32 %v90_v1, 30  ;;  %v114_v24 = vsub.s32 4, %v90_v1 }
  0xa4   :  { %v92_v3 = vsub.s32 %v88_v63, %v91_v2  ;;  %v115_v27 = vsel %vm30_vm8, %v114_v24, %v90_v1 }
  0xa5   :  { %v117_v28 = vsel %vm29_vm9, 0, %v115_v27 }
  0xa6   :  { %v94_v4 = vsub.s32 0, %v92_v3  ;;  %v121_v29 = vadd.s32 3, %v117_v28  ;;  %v227_v31 = vand.u32 3, %v117_v28 }
  0xa8   :  { %v243_v5 = vmin.u32 %v94_v4, %v92_v3  ;;  %v122_v30 = vand.u32 3, %v121_v29  ;;  %vm232_vm12 = vcmp.eq.s32.totalorder %v227_v31, 2  ;;  %vm229_vm14 = vcmp.eq.s32.totalorder %v227_v31, 0 }
  0xa9   :  { %vm228_vm0 = vcmp.lt.s32.totalorder %v227_v31, 2 }
  0xaa   :  { %v96_v6 = vclz %v243_v5  ;;  %vm127_vm11 = vcmp.eq.s32.totalorder %v122_v30, 2  ;;  %vm124_vm13 = vcmp.eq.s32.totalorder %v122_v30, 0  ;;  %vm123_vm15 = vcmp.lt.s32.totalorder %v122_v30, 2 }
  0xac   :  { %v244_v7 = vadd.s32 4294967294, %v96_v6 }
  0xae   :  { %vm245_vm7 = vcmp.lt.s32.totalorder %v244_v7, 0 }
  0xaf   :  { %v99_v8 = vsel %vm245_vm7, 0, %v244_v7 }
  0xb0   :  { %v100_v11 = vsub.s32 32, %v99_v8  ;;  %v104_v12 = vsub.s32 4294967266, %v99_v8  ;;  %v101_v13 = vshll.u32 %v92_v3, %v99_v8 }
  0xb2   :  { %v102_v15 = vshrl.u32 %v84_v10, %v100_v11  ;;  %v105_v16 = vadd.s32 127, %v104_v12 }
  0xb4   :  { %v103_v17 = vor.u32 %v102_v15, %v101_v13  ;;  %v106_v18 = vshll.u32 %v105_v16, 23 }
  0xb6   :  { %v107_v19 = vor.u32 4788187, %v106_v18  ;;  %v110_v21 = vcvt.s32.f32 %v103_v17 }
  0xb8   :  { %v108_v20 = vand.u32 2147483647, %v107_v19 }
  0xba   :  { %v111_v22 = vmul.f32 %v110_v21, %v108_v20 }
  0xbc   :  { %v112_v23 = vxor.u32 2147483648, %v111_v22 }
  0xbe   :  { %v113_v25 = vsel %vm30_vm8, %v112_v23, %v111_v22 }
  0xbf   :  { %v116_v26 = vsel %vm29_vm9, %v297_v9, %v113_v25 }
  0xc0   :  { %262 = vcosq.f32 %v116_v26 }
  0xc1   :  { %264 = vsinq.f32 %v116_v26 }
  0xcd   :  { %v263_v32 = vpop.eup %262 }
  0xce   :  { %v265_v33 = vpop.eup %264  ;;  %v128_v34 = vxor.u32 2147483648, %v263_v32 }
  0xcf   :  { %v125_v35 = vxor.u32 2147483648, %v265_v33 }
  0xd0   :  { %v129_v36 = vsel %vm127_vm11, %v128_v34, %v265_v33  ;;  %v234_v14 = vsel %vm232_vm12, %v128_v34, %v265_v33 }
  0xd1   :  { %v126_v37 = vsel %vm124_vm13, %v263_v32, %v125_v35  ;;  %v231_v38 = vsel %vm229_vm14, %v263_v32, %v125_v35 }
  0xd2   :  { %v130_v39 = vsel %vm123_vm15, %v126_v37, %v129_v36  ;;  %v235_v40 = vsel %vm228_vm0, %v231_v38, %v234_v14 }
  0xd3   :  { %v131_v41 = vsel %vm120_vm1, nan, %v130_v39  ;;  %v236_v42 = vsel %vm120_vm1, nan, %v235_v40 }
  0xd4   :  { %133 = vst.msk [vmem:[%s328_s2 + $0x1] sm:$0xff] %vm132_vm10, %v131_v41  ;;  %237 = vst.msk [vmem:[%s328_s2 + $0x9] sm:$0xff] %vm132_vm10, %v236_v42 }

</bundles_post_ra>
